<compile_context>
chip_gen: v7x
topology: tpu7x:2x2x1
jax: 0.10.0
libtpu: 0.0.40
codegen_flags: <defaults>
</compile_context>

<pallas_src>
import functools

import jax
import jax.numpy as jnp
from jax.experimental import pallas as pl
from jax.experimental.pallas import tpu as pltpu

IN_FEATURES = 784
HIDDEN = 30
OUT_FEATURES = 10

# Lane-padded feature sizes (full 128-lane vregs).
HIDDEN_PAD = 128
OUT_PAD = 128


def _round_up(x, m):
    return (x + m - 1) // m * m


def mlp_kernel(x_ref, w1_ref, b1_ref, w2_ref, b2_ref, o_ref):
    """Fused 2-layer MLP: sigmoid(sigmoid(x@W1+b1)@W2+b2) for one batch tile."""
    x = x_ref[...]                                            # (TB, 784) f32
    # Layer 1: (TB, 784) @ (784, 128) -> (TB, 128), f32 accumulate on MXU.
    h = jnp.dot(x, w1_ref[...], preferred_element_type=jnp.float32)
    h = jax.nn.sigmoid(h + b1_ref[...])                       # broadcast (1, 128)
    # Layer 2: (TB, 128) @ (128, 128) -> (TB, 128).
    o = jnp.dot(h, w2_ref[...], preferred_element_type=jnp.float32)
    o_ref[...] = jax.nn.sigmoid(o + b2_ref[...]).astype(o_ref.dtype)


@functools.partial(jax.jit, static_argnames=("batch_tile",))
def torch_mlp_forward(x_nchw, w1, b1, w2, b2, *, batch_tile=512):
    """x_nchw: (B, C, H, W) with C*H*W == 784. Returns (B, 10) float32."""
    b = x_nchw.shape[0]
    x2d = x_nchw.reshape(b, -1).astype(jnp.float32)           # nn.Flatten semantics
    assert x2d.shape[1] == IN_FEATURES

    # Sublane-aligned batch tiling; never larger than the (padded) batch.
    bt = min(_round_up(batch_tile, 8), _round_up(b, 8))
    b_pad = _round_up(b, bt)
    if b_pad != b:
        x2d = jnp.pad(x2d, ((0, b_pad - b), (0, 0)))

    # Zero-pad weights/biases to lane-dense shapes (layout plumbing only).
    w1p = jnp.zeros((IN_FEATURES, HIDDEN_PAD), jnp.float32).at[:, :HIDDEN].set(w1)
    b1p = jnp.zeros((1, HIDDEN_PAD), jnp.float32).at[:, :HIDDEN].set(b1)
    w2p = jnp.zeros((HIDDEN_PAD, OUT_PAD), jnp.float32).at[:HIDDEN, :OUT_FEATURES].set(w2)
    b2p = jnp.zeros((1, OUT_PAD), jnp.float32).at[:, :OUT_FEATURES].set(b2)

    grid = (b_pad // bt,)
    flops = 2 * b_pad * (IN_FEATURES * HIDDEN_PAD + HIDDEN_PAD * OUT_PAD)
    bytes_accessed = (
        b_pad * IN_FEATURES * 4                                # x
        + (IN_FEATURES * HIDDEN_PAD + HIDDEN_PAD * OUT_PAD) * 4  # weights
        + (HIDDEN_PAD + OUT_PAD) * 4                           # biases
        + b_pad * OUT_PAD * 4                                  # output
    )

    out = pl.pallas_call(
        mlp_kernel,
        out_shape=jax.ShapeDtypeStruct((b_pad, OUT_PAD), jnp.float32),
        grid_spec=pltpu.PrefetchScalarGridSpec(
            num_scalar_prefetch=0,
            grid=grid,
            in_specs=[
                pl.BlockSpec((bt, IN_FEATURES), lambda i: (i, 0)),
                pl.BlockSpec((IN_FEATURES, HIDDEN_PAD), lambda i: (0, 0)),
                pl.BlockSpec((1, HIDDEN_PAD), lambda i: (0, 0)),
                pl.BlockSpec((HIDDEN_PAD, OUT_PAD), lambda i: (0, 0)),
                pl.BlockSpec((1, OUT_PAD), lambda i: (0, 0)),
            ],
            out_specs=pl.BlockSpec((bt, OUT_PAD), lambda i: (i, 0)),
        ),
        compiler_params=pltpu.CompilerParams(
            dimension_semantics=("parallel",),
        ),
        cost_estimate=pl.CostEstimate(
            flops=flops,
            transcendentals=b_pad * (HIDDEN_PAD + OUT_PAD),
            bytes_accessed=bytes_accessed,
        ),
    )(x2d, w1p, b1p, w2p, b2p)

    # Drop padded batch rows and padded output lanes.
    return out[:b, :OUT_FEATURES]


def init_params(key):
    """Deterministic init mirroring nn.Linear shapes (uniform +-1/sqrt(fan_in))."""
    k1, k2, k3, k4 = jax.random.split(key, 4)
    lim1 = 1.0 / jnp.sqrt(jnp.float32(IN_FEATURES))
    lim2 = 1.0 / jnp.sqrt(jnp.float32(HIDDEN))
    # Stored as (in, out) so the kernel computes x @ W (== torch x @ W.T).
    w1 = jax.random.uniform(k1, (IN_FEATURES, HIDDEN), jnp.float32, -lim1, lim1)
    b1 = jax.random.uniform(k2, (1, HIDDEN), jnp.float32, -lim1, lim1)
    w2 = jax.random.uniform(k3, (HIDDEN, OUT_FEATURES), jnp.float32, -lim2, lim2)
    b2 = jax.random.uniform(k4, (1, OUT_FEATURES), jnp.float32, -lim2, lim2)
    return w1, b1, w2, b2


if __name__ == "__main__":
    key = jax.random.PRNGKey(0)
    kx, kp = jax.random.split(key)

    # Small MNIST-like batch: (B, C, H, W) = (8, 1, 28, 28) -> flatten to 784.
    x = jax.random.normal(kx, (8, 1, 28, 28), jnp.float32)
    w1, b1, w2, b2 = init_params(kp)

    out = torch_mlp_forward(x, w1, b1, w2, b2)
    out = jax.block_until_ready(out)

    # Pure-JAX reference check of the fused kernel.
    x2d = x.reshape(x.shape[0], -1)
    ref = jax.nn.sigmoid(jax.nn.sigmoid(x2d @ w1 + b1) @ w2 + b2)
    assert out.shape == (8, 10)
    assert jnp.allclose(out, ref, atol=1e-5, rtol=1e-5)

    print("KERNEL_OK")
</pallas_src>

<mosaic_0001>
module attributes {stable_mosaic.version = 11 : i64} {
  func.func @mlp_kernel(%arg0: i32, %arg1: memref<8x784xf32, #tpu.memory_space<vmem>>, %arg2: memref<784x128xf32, #tpu.memory_space<vmem>>, %arg3: memref<1x128xf32, #tpu.memory_space<vmem>>, %arg4: memref<128x128xf32, #tpu.memory_space<vmem>>, %arg5: memref<1x128xf32, #tpu.memory_space<vmem>>, %arg6: memref<8x128xf32, #tpu.memory_space<vmem>>) attributes {dimension_semantics = [#tpu.dimension_semantics<parallel>], iteration_bounds = array<i64: 1>, scalar_prefetch = 0 : i64, scratch_operands = 0 : i64, tpu.core_type = #tpu.core_type<tc>, window_params = [{transform_indices = @transform_0, window_bounds = array<i64: 8, 784>}, {pipeline_mode = #tpu.pipeline_mode<synchronous>, transform_indices = @transform_1, window_bounds = array<i64: 784, 128>}, {pipeline_mode = #tpu.pipeline_mode<synchronous>, transform_indices = @transform_2, window_bounds = array<i64: 1, 128>}, {pipeline_mode = #tpu.pipeline_mode<synchronous>, transform_indices = @transform_3, window_bounds = array<i64: 128, 128>}, {pipeline_mode = #tpu.pipeline_mode<synchronous>, transform_indices = @transform_4, window_bounds = array<i64: 1, 128>}, {transform_indices = @transform_5, window_bounds = array<i64: 8, 128>}]} {
    %c0 = arith.constant 0 : index
    %c0_0 = arith.constant 0 : index
    %0 = vector.load %arg1[%c0, %c0_0] : memref<8x784xf32, #tpu.memory_space<vmem>>, vector<8x784xf32>
    %c0_1 = arith.constant 0 : index
    %c0_2 = arith.constant 0 : index
    %1 = vector.load %arg2[%c0_1, %c0_2] : memref<784x128xf32, #tpu.memory_space<vmem>>, vector<784x128xf32>
    %cst = arith.constant dense<0.000000e+00> : vector<8x128xf32>
    %2 = tpu.matmul %0, %1, %cst {dimension_numbers = #tpu.dot_dimension_numbers<[1], [0], [0], [1], [0, 0, 1, 1], [], []>} : vector<8x784xf32>, vector<784x128xf32>, vector<8x128xf32> -> vector<8x128xf32>
    %c0_3 = arith.constant 0 : index
    %c0_4 = arith.constant 0 : index
    %3 = vector.load %arg3[%c0_3, %c0_4] : memref<1x128xf32, #tpu.memory_space<vmem>>, vector<1x128xf32>
    %4 = vector.broadcast %3 : vector<1x128xf32> to vector<8x128xf32>
    %5 = arith.addf %2, %4 : vector<8x128xf32>
    %6 = arith.negf %5 : vector<8x128xf32>
    %7 = math.exp %6 : vector<8x128xf32>
    %cst_5 = arith.constant 1.000000e+00 : f32
    %8 = vector.broadcast %cst_5 : f32 to vector<8x128xf32>
    %9 = arith.addf %8, %7 : vector<8x128xf32>
    %10 = arith.divf %8, %9 : vector<8x128xf32>
    %c0_6 = arith.constant 0 : index
    %c0_7 = arith.constant 0 : index
    %11 = vector.load %arg4[%c0_6, %c0_7] : memref<128x128xf32, #tpu.memory_space<vmem>>, vector<128x128xf32>
    %cst_8 = arith.constant dense<0.000000e+00> : vector<8x128xf32>
    %12 = tpu.matmul %10, %11, %cst_8 {dimension_numbers = #tpu.dot_dimension_numbers<[1], [0], [0], [1], [0, 0, 1, 1], [], []>} : vector<8x128xf32>, vector<128x128xf32>, vector<8x128xf32> -> vector<8x128xf32>
    %c0_9 = arith.constant 0 : index
    %c0_10 = arith.constant 0 : index
    %13 = vector.load %arg5[%c0_9, %c0_10] : memref<1x128xf32, #tpu.memory_space<vmem>>, vector<1x128xf32>
    %14 = vector.broadcast %13 : vector<1x128xf32> to vector<8x128xf32>
    %15 = arith.addf %12, %14 : vector<8x128xf32>
    %16 = arith.negf %15 : vector<8x128xf32>
    %17 = math.exp %16 : vector<8x128xf32>
    %cst_11 = arith.constant 1.000000e+00 : f32
    %18 = vector.broadcast %cst_11 : f32 to vector<8x128xf32>
    %19 = arith.addf %18, %17 : vector<8x128xf32>
    %20 = arith.divf %18, %19 : vector<8x128xf32>
    %c0_12 = arith.constant 0 : index
    %c0_13 = arith.constant 0 : index
    %21 = vector.load %arg6[%c0_12, %c0_13] : memref<8x128xf32, #tpu.memory_space<vmem>>, vector<8x128xf32>
    tpu.vector_store %arg6[%c0_12, %c0_13], %20 {strides = array<i32>} : memref<8x128xf32, #tpu.memory_space<vmem>>, vector<8x128xf32>,
    return
  }
  func.func @transform_0(%arg0: i32) -> (i32, i32) {
    %c0_i32 = arith.constant 0 : i32
    %c0_i32_0 = arith.constant 0 : i32
    return %arg0, %c0_i32 : i32, i32
  }
  func.func @transform_1(%arg0: i32) -> (i32, i32) {
    %c0_i32 = arith.constant 0 : i32
    %c0_i32_0 = arith.constant 0 : i32
    %c0_i32_1 = arith.constant 0 : i32
    return %c0_i32, %c0_i32_0 : i32, i32
  }
  func.func @transform_2(%arg0: i32) -> (i32, i32) {
    %c0_i32 = arith.constant 0 : i32
    %c0_i32_0 = arith.constant 0 : i32
    %c0_i32_1 = arith.constant 0 : i32
    return %c0_i32, %c0_i32_0 : i32, i32
  }
  func.func @transform_3(%arg0: i32) -> (i32, i32) {
    %c0_i32 = arith.constant 0 : i32
    %c0_i32_0 = arith.constant 0 : i32
    %c0_i32_1 = arith.constant 0 : i32
    return %c0_i32, %c0_i32_0 : i32, i32
  }
  func.func @transform_4(%arg0: i32) -> (i32, i32) {
    %c0_i32 = arith.constant 0 : i32
    %c0_i32_0 = arith.constant 0 : i32
    %c0_i32_1 = arith.constant 0 : i32
    return %c0_i32, %c0_i32_0 : i32, i32
  }
  func.func @transform_5(%arg0: i32) -> (i32, i32) {
    %c0_i32 = arith.constant 0 : i32
    %c0_i32_0 = arith.constant 0 : i32
    return %arg0, %c0_i32 : i32, i32
  }
}

</mosaic_0001>

<bundles_post_ra>
// kernel: torch_mlp_forward.1
= control target key start
LH: loop header
LB: loop body
LE: loop exit
PB: predicated region body
PF: predicated region fallthrough
CT: control target
= control target key end

     0   :  { %s1292_s0 = inlined_call_operand.vmem [shape: f32[8,784], index: 0, kind: input, shape index: {}]   ;;  %s1293_s1 = inlined_call_operand.vmem [shape: f32[784,128], index: 1, kind: input, shape index: {}]   ;;  %s1294_s2 = inlined_call_operand.vmem [shape: f32[1,128], index: 2, kind: input, shape index: {}]   ;;  %s1295_s3 = inlined_call_operand.vmem [shape: f32[128,128], index: 3, kind: input, shape index: {}]   ;;  %s1296_s4 = inlined_call_operand.vmem [shape: f32[1,128], index: 4, kind: input, shape index: {}]   ;;  %s1297_s5 = inlined_call_operand.hbm [shape: f32[8,128], index: 5, kind: output, shape index: {}]  }
   0x1   :  { %v44_v0 = vld [vmem:[%s1293_s1 + $0x80] sm:$0xff]  ;;  %v45_v1 = vld [vmem:[%s1293_s1 + $0x88] sm:$0xff]  ;;  %v46_v11 = vld [vmem:[%s1293_s1 + $0x90] sm:$0xff] }
   0x2   :  { %v28_v2 = vld [vmem:[%s1293_s1] sm:$0xff]  ;;  %v709_v3 = vpack.c.bf16 %v45_v1, %v44_v0  ;;  %v29_v4 = vld [vmem:[%s1293_s1 + $0x8] sm:$0xff]  ;;  %v47_v13 = vld [vmem:[%s1293_s1 + $0x98] sm:$0xff] }
   0x3   :  { %v76_v5 = vld [vmem:[%s1293_s1 + $0x180] sm:$0xff]  ;;  %v77_v6 = vld [vmem:[%s1293_s1 + $0x188] sm:$0xff]  ;;  %v711_v7 = vpack.c.bf16 %v29_v4, %v28_v2  ;;  %v30_v14 = vld [vmem:[%s1293_s1 + $0x10] sm:$0xff]  ;;  %v713_v16 = vpack.c.bf16 %v47_v13, %v46_v11 }
   0x4   :  { %v741_v8 = vpack.c.bf16 %v77_v6, %v76_v5  ;;  %v60_v9 = vld [vmem:[%s1293_s1 + $0x100] sm:$0xff]  ;;  %v61_v10 = vld [vmem:[%s1293_s1 + $0x108] sm:$0xff]  ;;  %710 = vmatprep.subr.bf16.mxu0 %v709_v3  ;;  %v31_v15 = vld [vmem:[%s1293_s1 + $0x18] sm:$0xff] }
   0x5   :  { %v743_v12 = vpack.c.bf16 %v61_v10, %v60_v9  ;;  %712 = vmatpush3.bf16.msra.mxu0 %v711_v7  ;;  %v715_v17 = vpack.c.bf16 %v31_v15, %v30_v14  ;;  %v78_v18 = vld [vmem:[%s1293_s1 + $0x190] sm:$0xff]  ;;  %v79_v19 = vld [vmem:[%s1293_s1 + $0x198] sm:$0xff]  ;;  %v48_v23 = vld [vmem:[%s1293_s1 + $0xa0] sm:$0xff] }
   0x6   :  { %742 = vmatprep.subr.bf16.mxu1 %v741_v8  ;;  %v62_v20 = vld [vmem:[%s1293_s1 + $0x110] sm:$0xff]  ;;  %v745_v21 = vpack.c.bf16 %v79_v19, %v78_v18  ;;  %v63_v22 = vld [vmem:[%s1293_s1 + $0x118] sm:$0xff]  ;;  %v49_v24 = vld [vmem:[%s1293_s1 + $0xa8] sm:$0xff]  ;;  %714 = vmatprep.subr.bf16.mxu0 %v713_v16 }
   0x7   :  { %744 = vmatpush3.bf16.msra.mxu1 %v743_v12  ;;  %v747_v25 = vpack.c.bf16 %v63_v22, %v62_v20  ;;  %v717_v26 = vpack.c.bf16 %v49_v24, %v48_v23  ;;  %v32_v27 = vld [vmem:[%s1293_s1 + $0x20] sm:$0xff]  ;;  %v33_v28 = vld [vmem:[%s1293_s1 + $0x28] sm:$0xff]  ;;  %v50_v35 = vld [vmem:[%s1293_s1 + $0xb0] sm:$0xff] }
   0x8   :  { %v80_v29 = vld [vmem:[%s1293_s1 + $0x1a0] sm:$0xff]  ;;  %746 = vmatprep.subr.bf16.mxu1 %v745_v21  ;;  %v81_v30 = vld [vmem:[%s1293_s1 + $0x1a8] sm:$0xff]  ;;  %v719_v33 = vpack.c.bf16 %v33_v28, %v32_v27  ;;  %v51_v36 = vld [vmem:[%s1293_s1 + $0xb8] sm:$0xff] }
   0x9   :  { %v64_v31 = vld [vmem:[%s1293_s1 + $0x120] sm:$0xff]  ;;  %v65_v32 = vld [vmem:[%s1293_s1 + $0x128] sm:$0xff]  ;;  %716 = vmatpush3.bf16.msra.mxu0 %v715_v17  ;;  %v749_v34 = vpack.c.bf16 %v81_v30, %v80_v29  ;;  %v34_v37 = vld [vmem:[%s1293_s1 + $0x30] sm:$0xff]  ;;  %v721_v39 = vpack.c.bf16 %v51_v36, %v50_v35 }
   0xa   :  { %718 = vmatprep.subr.bf16.mxu0 %v717_v26  ;;  %v751_v38 = vpack.c.bf16 %v65_v32, %v64_v31  ;;  %v35_v40 = vld [vmem:[%s1293_s1 + $0x38] sm:$0xff]  ;;  %v82_v41 = vld [vmem:[%s1293_s1 + $0x1b0] sm:$0xff]  ;;  %v52_v46 = vld [vmem:[%s1293_s1 + $0xc0] sm:$0xff] }
   0xb   :  { %748 = vmatpush3.bf16.msra.mxu1 %v747_v25  ;;  %v83_v42 = vld [vmem:[%s1293_s1 + $0x1b8] sm:$0xff]  ;;  %v66_v44 = vld [vmem:[%s1293_s1 + $0x130] sm:$0xff]  ;;  %v53_v47 = vld [vmem:[%s1293_s1 + $0xc8] sm:$0xff]  ;;  %v723_v48 = vpack.c.bf16 %v35_v40, %v34_v37 }
   0xc   :  { %750 = vmatprep.subr.bf16.mxu1 %v749_v34  ;;  %v753_v43 = vpack.c.bf16 %v83_v42, %v82_v41  ;;  %v67_v45 = vld [vmem:[%s1293_s1 + $0x138] sm:$0xff]  ;;  %v84_v49 = vld [vmem:[%s1293_s1 + $0x1c0] sm:$0xff]  ;;  %v85_v50 = vld [vmem:[%s1293_s1 + $0x1c8] sm:$0xff]  ;;  %v725_v52 = vpack.c.bf16 %v53_v47, %v52_v46 }
   0xd   :  { %720 = vmatpush3.bf16.msra.mxu0 %v719_v33  ;;  %v755_v51 = vpack.c.bf16 %v67_v45, %v66_v44  ;;  %v36_v53 = vld [vmem:[%s1293_s1 + $0x40] sm:$0xff]  ;;  %v37_v54 = vld [vmem:[%s1293_s1 + $0x48] sm:$0xff]  ;;  %v757_v56 = vpack.c.bf16 %v85_v50, %v84_v49  ;;  %v54_v58 = vld [vmem:[%s1293_s1 + $0xd0] sm:$0xff]  ;;  %v868_v50 = vmov 0.0|0.0  }
   0xe   :  { %722 = vmatprep.subr.bf16.mxu0 %v721_v39  ;;  %v68_v55 = vld [vmem:[%s1293_s1 + $0x140] sm:$0xff]  ;;  %v69_v57 = vld [vmem:[%s1293_s1 + $0x148] sm:$0xff]  ;;  %v55_v59 = vld [vmem:[%s1293_s1 + $0xd8] sm:$0xff]  ;;  %v727_v62 = vpack.c.bf16 %v37_v54, %v36_v53 }
   0xf   :  { %752 = vmatpush3.bf16.msra.mxu1 %v751_v38  ;;  %v86_v60 = vld [vmem:[%s1293_s1 + $0x1d0] sm:$0xff]  ;;  %v87_v61 = vld [vmem:[%s1293_s1 + $0x1d8] sm:$0xff]  ;;  %v759_v63 = vpack.c.bf16 %v69_v57, %v68_v55  ;;  %v729_v0 = vpack.c.bf16 %v55_v59, %v54_v58  ;;  %v56_v6 = vld [vmem:[%s1293_s1 + $0xe0] sm:$0xff] }
  0x10   :  { %754 = vmatprep.subr.bf16.mxu1 %v753_v43  ;;  %v38_v1 = vld [vmem:[%s1293_s1 + $0x50] sm:$0xff]  ;;  %v39_v2 = vld [vmem:[%s1293_s1 + $0x58] sm:$0xff]  ;;  %v761_v4 = vpack.c.bf16 %v87_v61, %v86_v60  ;;  %v57_v7 = vld [vmem:[%s1293_s1 + $0xe8] sm:$0xff] }
  0x11   :  { %724 = vmatpush3.bf16.msra.mxu0 %v723_v48  ;;  %v70_v3 = vld [vmem:[%s1293_s1 + $0x150] sm:$0xff]  ;;  %v71_v5 = vld [vmem:[%s1293_s1 + $0x158] sm:$0xff]  ;;  %v88_v8 = vld [vmem:[%s1293_s1 + $0x1e0] sm:$0xff]  ;;  %v731_v10 = vpack.c.bf16 %v39_v2, %v38_v1  ;;  %v733_v14 = vpack.c.bf16 %v57_v7, %v56_v6 }
  0x12   :  { %726 = vmatprep.subr.bf16.mxu0 %v725_v52  ;;  %v89_v9 = vld [vmem:[%s1293_s1 + $0x1e8] sm:$0xff]  ;;  %v40_v11 = vld [vmem:[%s1293_s1 + $0x60] sm:$0xff]  ;;  %v763_v13 = vpack.c.bf16 %v71_v5, %v70_v3  ;;  %v58_v19 = vld [vmem:[%s1293_s1 + $0xf0] sm:$0xff] }
  0x13   :  { %756 = vmatpush3.bf16.msra.mxu1 %v755_v51  ;;  %v22_v12 = vld [vmem:[%s1292_s0 + $0x8] sm:$0xff]  ;;  %v72_v16 = vld [vmem:[%s1293_s1 + $0x160] sm:$0xff]  ;;  %v765_v18 = vpack.c.bf16 %v89_v9, %v88_v8  ;;  %v59_v20 = vld [vmem:[%s1293_s1 + $0xf8] sm:$0xff] }
  0x14   :  { %758 = vmatprep.subr.bf16.mxu1 %v757_v56  ;;  %v41_v15 = vld [vmem:[%s1293_s1 + $0x68] sm:$0xff]  ;;  %201 = vmatprep.mubr.f32.mxu0 %v22_v12  ;;  %v24_v21 = vld [vmem:[%s1292_s0 + $0x18] sm:$0xff]  ;;  %v90_v22 = vld [vmem:[%s1293_s1 + $0x1f0] sm:$0xff]  ;;  %v737_v26 = vpack.c.bf16 %v59_v20, %v58_v19 }
  0x15   :  { %728 = vmatpush3.bf16.msra.mxu0 %v727_v62  ;;  %v73_v17 = vld [vmem:[%s1293_s1 + $0x168] sm:$0xff]  ;;  %v91_v23 = vld [vmem:[%s1293_s1 + $0x1f8] sm:$0xff]  ;;  %271 = vmatprep.mubr.f32.mxu1 %v24_v21  ;;  %v735_v24 = vpack.c.bf16 %v41_v15, %v40_v11  ;;  %v42_v27 = vld [vmem:[%s1293_s1 + $0x70] sm:$0xff] }
  0x16   :  { %730 = vmatprep.subr.bf16.mxu0 %v729_v0  ;;  %v767_v25 = vpack.c.bf16 %v73_v17, %v72_v16  ;;  %v43_v28 = vld [vmem:[%s1293_s1 + $0x78] sm:$0xff]  ;;  %v74_v29 = vld [vmem:[%s1293_s1 + $0x170] sm:$0xff]  ;;  %v769_v30 = vpack.c.bf16 %v91_v23, %v90_v22  ;;  %v108_v32 = vld [vmem:[%s1293_s1 + $0x280] sm:$0xff] }
  0x17   :  { %760 = vmatpush3.bf16.msra.mxu1 %v759_v63  ;;  %v75_v31 = vld [vmem:[%s1293_s1 + $0x178] sm:$0xff]  ;;  %v109_v33 = vld [vmem:[%s1293_s1 + $0x288] sm:$0xff]  ;;  %v739_v34 = vpack.c.bf16 %v43_v28, %v42_v27  ;;  %v92_v37 = vld [vmem:[%s1293_s1 + $0x200] sm:$0xff] }
  0x18   :  { %762 = vmatprep.subr.bf16.mxu1 %v761_v4  ;;  %v771_v35 = vpack.c.bf16 %v75_v31, %v74_v29  ;;  %v773_v36 = vpack.c.bf16 %v109_v33, %v108_v32  ;;  %v93_v38 = vld [vmem:[%s1293_s1 + $0x208] sm:$0xff]  ;;  %v110_v39 = vld [vmem:[%s1293_s1 + $0x290] sm:$0xff]  ;;  %v111_v40 = vld [vmem:[%s1293_s1 + $0x298] sm:$0xff] }
  0x19   :  { %732 = vmatpush3.bf16.msra.mxu0 %v731_v10  ;;  %v21_v41 = vld [vmem:[%s1292_s0] sm:$0xff]  ;;  %v775_v42 = vpack.c.bf16 %v93_v38, %v92_v37  ;;  %v23_v43 = vld [vmem:[%s1292_s0 + $0x10] sm:$0xff]  ;;  %v777_v45 = vpack.c.bf16 %v111_v40, %v110_v39  ;;  %v95_v46 = vld [vmem:[%s1293_s1 + $0x218] sm:$0xff] }
  0x1a   :  { %734 = vmatprep.subr.bf16.mxu0 %v733_v14  ;;  %v94_v44 = vld [vmem:[%s1293_s1 + $0x210] sm:$0xff]  ;;  %v112_v47 = vld [vmem:[%s1293_s1 + $0x2a0] sm:$0xff]  ;;  %v113_v48 = vld [vmem:[%s1293_s1 + $0x2a8] sm:$0xff] }
  0x1b   :  { %764 = vmatpush3.bf16.msra.mxu1 %v763_v13  ;;  %v26_v49 = vld [vmem:[%s1292_s0 + $0x28] sm:$0xff]  ;;  %v124_v51 = vld [vmem:[%s1293_s1 + $0x300] sm:$0xff] }
  0x1c   :  { %766 = vmatprep.subr.bf16.mxu1 %v765_v18  ;;  %v125_v52 = vld [vmem:[%s1293_s1 + $0x308] sm:$0xff] }
  0x1d   :  { %736 = vmatpush3.bf16.msra.mxu0 %v735_v24  ;;  %v806_v53 = vpack.c.bf16 %v125_v52, %v124_v51 }
  0x1e   :  { %738 = vmatprep.subr.bf16.mxu0 %v737_v26 }
  0x1f   :  { %768 = vmatpush3.bf16.msra.mxu1 %v767_v25 }
  0x20   :  { %770 = vmatprep.subr.bf16.mxu1 %v769_v30 }
  0x21   :  { %740 = vmatpush3.bf16.msra.mxu0 %v739_v34 }
  0x22   :  { %774 = vmatprep.subr.bf16.mxu0 %v773_v36 }
  0x23   :  { %772 = vmatpush3.bf16.msra.mxu1 %v771_v35 }
  0x24   :  { %805 = vmatprep.subr.bf16.mxu1 %v868_v50  ;;  %202 = vmatmul.mubr.f32.vlgmr.msra.gmra.mrb[0].mxu0 %v21_v41 }
  0x25   :  { %10 = vsyncpa [#allocation3], 0  ;;  %776 = vmatpush3.bf16.msra.mxu0 %v775_v42  ;;  %v779_v54 = vpack.c.bf16 %v95_v46, %v94_v44  ;;  %v781_v55 = vpack.c.bf16 %v113_v48, %v112_v47  ;;  %v96_v56 = vld [vmem:[%s1293_s1 + $0x220] sm:$0xff]  ;;  %v97_v57 = vld [vmem:[%s1293_s1 + $0x228] sm:$0xff]  ;;  %341 = vmatprep.mubr.f32.mxu0 %v26_v49  ;;  %vm869_vm0 = vmmov 0   ;;  %v870_v60 = vmov 0.0  }
  0x26   :  { %272 = vmatmul.mubr.f32.vlgmr.msra.gmra.mrb[0].mxu1 %v23_v43  ;;  %778 = vmatprep.subr.bf16.mxu0 %v777_v45  ;;  %v114_v58 = vld [vmem:[%s1293_s1 + $0x2b0] sm:$0xff]  ;;  %v115_v59 = vld [vmem:[%s1293_s1 + $0x2b8] sm:$0xff]  ;;  %vm133_vm1 = vcmask 130048   ;;  %v783_v62 = vpack.c.bf16 %v97_v57, %v96_v56  ;;  %v116_v2 = vld [vmem:[%s1293_s1 + $0x2c0] sm:$0xff]  ;;  %s871_s9 = smov [#allocation2]  }
  0x27   :  { %807 = vmatpush3.bf16.msra.mxu1 %v806_v53  ;;  %671 = vmatprep.mubr.msk.f32.mxu1 %vm869_vm0, %v870_v60  ;;  %v27_v61 = vld [vmem:[%s1292_s0 + $0x30] sm:$0xff]  ;;  %v785_v63 = vpack.c.bf16 %v115_v59, %v114_v58  ;;  %v99_v1 = vld [vmem:[%s1293_s1 + $0x238] sm:$0xff]  ;;  %v117_v3 = vld [vmem:[%s1293_s1 + $0x2c8] sm:$0xff] }
  0x28   :  { %808 = vmatprep.subr.bf16.mxu1 %v868_v50  ;;  %v98_v0 = vld [vmem:[%s1293_s1 + $0x230] sm:$0xff]  ;;  %v789_v5 = vpack.c.bf16 %v117_v3, %v116_v2  ;;  %v100_v6 = vld [vmem:[%s1293_s1 + $0x240] sm:$0xff]  ;;  %v101_v7 = vld [vmem:[%s1293_s1 + $0x248] sm:$0xff] }
  0x29   :  { %780 = vmatpush3.bf16.msra.mxu0 %v779_v54  ;;  %v787_v4 = vpack.c.bf16 %v99_v1, %v98_v0  ;;  %v118_v8 = vld [vmem:[%s1293_s1 + $0x2d0] sm:$0xff]  ;;  %v119_v9 = vld [vmem:[%s1293_s1 + $0x2d8] sm:$0xff]  ;;  %v791_v10 = vpack.c.bf16 %v101_v7, %v100_v6  ;;  %v120_v14 = vld [vmem:[%s1293_s1 + $0x2e0] sm:$0xff] }
  0x2a   :  { %782 = vmatprep.subr.bf16.mxu0 %v781_v55  ;;  %672 = vmatmul.mubr.msk.f32.vlgmr.msra.gmra.mrb[2].mxu1 %vm133_vm1, %v27_v61  ;;  %v793_v11 = vpack.c.bf16 %v119_v9, %v118_v8  ;;  %v102_v12 = vld [vmem:[%s1293_s1 + $0x250] sm:$0xff]  ;;  %v103_v13 = vld [vmem:[%s1293_s1 + $0x258] sm:$0xff]  ;;  %v121_v15 = vld [vmem:[%s1293_s1 + $0x2e8] sm:$0xff] }
  0x2b   :  { %706 = vmatprep.mubr.msk.f32.mxu1 %vm869_vm0, %v870_v60  ;;  %v795_v16 = vpack.c.bf16 %v103_v13, %v102_v12  ;;  %v797_v17 = vpack.c.bf16 %v121_v15, %v120_v14  ;;  %v104_v18 = vld [vmem:[%s1293_s1 + $0x260] sm:$0xff]  ;;  %v105_v19 = vld [vmem:[%s1293_s1 + $0x268] sm:$0xff]  ;;  %v122_v20 = vld [vmem:[%s1293_s1 + $0x2f0] sm:$0xff] }
  0x2c   :  { %v123_v21 = vld [vmem:[%s1293_s1 + $0x2f8] sm:$0xff]  ;;  %v799_v22 = vpack.c.bf16 %v105_v19, %v104_v18  ;;  %v106_v24 = vld [vmem:[%s1293_s1 + $0x270] sm:$0xff]  ;;  %v25_v27 = vld [vmem:[%s1292_s0 + $0x20] sm:$0xff]  ;;  %s529_s0 = sshll.u32 %s871_s9, 4  ;;  %s530_s0 = int_to_ptr.vmem [resolvable:$true] %s529_s0 }
  0x2d   :  { %784 = vmatpush3.bf16.msra.mxu0 %v783_v62  ;;  %v801_v23 = vpack.c.bf16 %v123_v21, %v122_v20  ;;  %v107_v25 = vld [vmem:[%s1293_s1 + $0x278] sm:$0xff]  ;;  %v423_v28 = vld [vmem:[%s1295_s3] sm:$0xff]  ;;  %v424_v29 = vld [vmem:[%s1295_s3 + $0x8] sm:$0xff]  ;;  %s844_s10 = scalar_lea.vmem %s530_s0, 128  ;;  %p849_p1 = scmp.lt.s32.totalorder %s530_s0, %s530_s0 }
  0x2e   :  { %786 = vmatprep.subr.bf16.mxu0 %v785_v63  ;;  %v803_v26 = vpack.c.bf16 %v107_v25, %v106_v24  ;;  %v809_v30 = vpack.c.bf16 %v424_v29, %v423_v28  ;;  %v425_v31 = vld [vmem:[%s1295_s3 + $0x10] sm:$0xff]  ;;  %v426_v32 = vld [vmem:[%s1295_s3 + $0x18] sm:$0xff]  ;;  %v427_v34 = vld [vmem:[%s1295_s3 + $0x20] sm:$0xff]  ;;  %p845_p0 = scmp.ne.s32.totalorder %s530_s0, %s844_s10  ;;  %p850_p2 = scmp.lt.s32.totalorder %s844_s10, %s844_s10 }
  0x2f   :  { %v812_v33 = vpack.c.bf16 %v426_v32, %v425_v31  ;;  %v428_v35 = vld [vmem:[%s1295_s3 + $0x28] sm:$0xff]  ;;  %v429_v37 = vld [vmem:[%s1295_s3 + $0x30] sm:$0xff]  ;;  %v430_v38 = vld [vmem:[%s1295_s3 + $0x38] sm:$0xff] }
  0x30   :  { %810 = vmatpush3.bf16.msra.mxu1 %v809_v30  ;;  %v815_v36 = vpack.c.bf16 %v428_v35, %v427_v34  ;;  %v818_v39 = vpack.c.bf16 %v430_v38, %v429_v37  ;;  %v431_v40 = vld [vmem:[%s1295_s3 + $0x40] sm:$0xff]  ;;  %v432_v41 = vld [vmem:[%s1295_s3 + $0x48] sm:$0xff]  ;;  %v433_v43 = vld [vmem:[%s1295_s3 + $0x50] sm:$0xff]  ;;  %p851_p3 = por %p850_p2, %p849_p1 }
  0x31   :  { %788 = vmatpush3.bf16.msra.mxu0 %v787_v4  ;;  %811 = vmatprep.subr.bf16.mxu1 %v868_v50  ;;  %v821_v42 = vpack.c.bf16 %v432_v41, %v431_v40  ;;  %v434_v44 = vld [vmem:[%s1295_s3 + $0x58] sm:$0xff]  ;;  %v435_v46 = vld [vmem:[%s1295_s3 + $0x60] sm:$0xff]  ;;  %v436_v47 = vld [vmem:[%s1295_s3 + $0x68] sm:$0xff] }
  0x32   :  { %790 = vmatprep.subr.bf16.mxu0 %v789_v5  ;;  %v824_v45 = vpack.c.bf16 %v434_v44, %v433_v43  ;;  %v827_v48 = vpack.c.bf16 %v436_v47, %v435_v46  ;;  %v437_v49 = vld [vmem:[%s1295_s3 + $0x70] sm:$0xff]  ;;  %v438_v51 = vld [vmem:[%s1295_s3 + $0x78] sm:$0xff]  ;;  %v537_v54 = vld [vmem:[%s1294_s2] ss:$0 sm:$0xff]  ;;  %p852_p4 = pnand %p851_p3, %p845_p0 }
  0x33   :  { %v830_v52 = vpack.c.bf16 %v438_v51, %v437_v49  ;;  %v540_v8 = vld [vmem:[%s1296_s4] ss:$0 sm:$0xff] }
  0x34   :  { %813 = vmatpush3.bf16.msra.mxu1 %v812_v33 }
  0x35   :  { %792 = vmatpush3.bf16.msra.mxu0 %v791_v10  ;;  %814 = vmatprep.subr.bf16.mxu1 %v868_v50 }
  0x36   :  { %794 = vmatprep.subr.bf16.mxu0 %v793_v11 }
  0x38   :  { %816 = vmatpush3.bf16.msra.mxu1 %v815_v36 }
  0x39   :  { %796 = vmatpush3.bf16.msra.mxu0 %v795_v16  ;;  %817 = vmatprep.subr.bf16.mxu1 %v868_v50 }
  0x3a   :  { %798 = vmatprep.subr.bf16.mxu0 %v797_v17 }
  0x3c   :  { %819 = vmatpush3.bf16.msra.mxu1 %v818_v39 }
  0x3d   :  { %800 = vmatpush3.bf16.msra.mxu0 %v799_v22  ;;  %820 = vmatprep.subr.bf16.mxu1 %v868_v50 }
  0x3e   :  { %802 = vmatprep.subr.bf16.mxu0 %v801_v23 }
  0x40   :  { %822 = vmatpush3.bf16.msra.mxu1 %v821_v42 }
  0x41   :  { %804 = vmatpush3.bf16.msra.mxu0 %v803_v26  ;;  %823 = vmatprep.subr.bf16.mxu1 %v868_v50 }
  0x44   :  { %342 = vmatmul.mubr.f32.vlgmr.msra.gmra.mrb[2].mxu0 %v25_v27  ;;  %825 = vmatpush3.bf16.msra.mxu1 %v824_v45 }
  0x45   :  { %826 = vmatprep.subr.bf16.mxu1 %v868_v50 }
  0x48   :  { %828 = vmatpush3.bf16.msra.mxu1 %v827_v48 }
  0x49   :  { %829 = vmatprep.subr.bf16.mxu1 %v868_v50 }
  0x4c   :  { %831 = vmatpush3.bf16.msra.mxu1 %v830_v52 }
  0xf7   :  { %v574_v53 = vpop.f32.mrb[0].mxu0 }
  0xf8   :  { %v575_v55 = vpop.f32.mrb[1].mxu0 }
  0xf9   :  { %v609_v56 = vpop.f32.mrb[0].mxu1  ;;  %v576_v57 = vadd.f32 %v575_v55, %v574_v53 }
  0xfa   :  { %v610_v58 = vpop.f32.mrb[1].mxu1 }
  0xfb   :  { %v611_v59 = vadd.f32 %v610_v58, %v609_v56  ;;  %v204_v60 = vadd.f32 %v576_v57, %v537_v54 }
  0xfd   :  { %v274_v61 = vadd.f32 %v611_v59, %v204_v60  ;;  %v413_v62 = vpop.f32.mrb[2].mxu1 }
  0xfe   :  { %v673_v63 = vpop.f32.mrb[3].mxu1 }
 0x117   :  { %v644_v0 = vpop.f32.mrb[2].mxu0 }
 0x118   :  { %v645_v1 = vpop.f32.mrb[3].mxu0 }
 0x119   :  { %v646_v2 = vadd.f32 %v645_v1, %v644_v0 }
 0x11b   :  { %v344_v3 = vadd.f32 %v646_v2, %v274_v61 }
 0x11d   :  { %v414_v50 = vadd.f32 %v413_v62, %v344_v3 }
 0x11f   :  { %v539_v4 = vmul.f32 -1.442695, %v414_v50 }
 0x121   :  { %836 = vpow2.f32 %v539_v4 }
 0x12b   :  { %v837_v5 = vpop.eup %836 }
 0x12c   :  { %v420_v6 = vadd.f32 1.0, %v837_v5 }
 0x12e   :  { %838 = vrcp.f32 %v420_v6 }
 0x138   :  { %v839_v7 = vpop.eup %838 }
 0x139   :  { %707 = vmatmul.mubr.f32.vlgmr.msra.gmra.mrb[4].mxu1 %v839_v7 }
 0x20c   :  { %v512_v9 = vpop.f32.mrb[4].mxu1 }
 0x20d   :  { %v513_v10 = vadd.f32 %v540_v8, %v512_v9  ;;  %v708_v11 = vpop.f32.mrb[5].mxu1 }
 0x20f   :  { %v541_v12 = vmul.f32 -1.442695, %v513_v10 }
 0x211   :  { %840 = vpow2.f32 %v541_v12 }
 0x21b   :  { %v841_v13 = vpop.eup %840 }
 0x21c   :  { %v519_v14 = vadd.f32 1.0, %v841_v13 }
 0x21e   :  { %842 = vrcp.f32 %v519_v14 }
 0x228   :  { %v843_v15 = vpop.eup %842 }
 0x229   :  { %522 = vst [vmem:[#allocation2] sm:$0xff] %v843_v15 }
 0x22a   :  { %855 = shalt.err (!%p852_p4)
}
 0x22b   :  { %s856_s12 = scalar_lea.hbm %s1297_s5, 128 }
 0x22c   :  { %p857_p5 = scmp.ne.s32.totalorder %s1297_s5, %s856_s12  ;;  %p860_p6 = scmp.lt.u32.totalorder %s856_s12, %s1297_s5 }
 0x22e   :  { %p862_p7 = pnand %p860_p6, %p857_p5 }
 0x230   :  { %865 = shalt.err (!%p862_p7)
}
 0x231   :  { %532 = dma.vmem_to_hbm [thread:$0]  %s530_s0, 128, %s1297_s5, [#allocation3]  }
 0x232   :  { %866 = dma.done.wait [#allocation3], 128  }
 0x233   :  { %867 = vsyncadd [#allocation3], 4294967168 }
 0x234   :  { %536 = vsyncpa [#allocation3], 1 }

</bundles_post_ra>
